<compile_context>
chip_gen: v5e
topology: v5e:2x2
jax: 0.10.0
libtpu: 0.0.40
codegen_flags: <defaults>
</compile_context>

<pallas_src>
import math

import jax
import jax.numpy as jnp
from jax.experimental import pallas as pl
from jax.experimental.pallas import tpu as pltpu


LANES = 128
# ~1 MiB x-block: double-buffered in+out working set ~4 MiB, comfortably under
# every generation's scoped-VMEM default (v5e 16 MiB, v6e/v7x 32 MiB).
_TARGET_BLOCK_BYTES = 1 << 20


def _drop_path_kernel(x_ref, scale_ref, o_ref):
    # x_ref / o_ref: (TB, TR, 128) tile.  scale_ref: (TB, 1, 1) f32 per-batch
    # scale (0 for dropped batches, 1/keep_prob for kept ones).
    o_ref[...] = x_ref[...] * scale_ref[...].astype(o_ref.dtype)


def _round_up(n, m):
    return ((n + m - 1) // m) * m


def drop_path_pallas(x, keep_prob=0.5, *, rng_key=None, training=True):
    """DropPath forward. x: (B, ...). Returns same shape/dtype."""
    if (not training) or keep_prob <= 0.0:
        # Module only applies drop_path when training and p > 0.
        return x
    if rng_key is None:
        raise ValueError("drop_path_pallas requires rng_key in training mode")

    orig_shape = x.shape
    B = x.shape[0]
    D = math.prod(x.shape[1:])
    itemsize = jnp.dtype(x.dtype).itemsize
    pack = 8 * (4 // itemsize)  # sublane packing: 8 f32, 16 bf16, 32 int8/fp8
    row_bytes = LANES * itemsize

    # Lane-dense (B, R_pad, 128) view with minimal padding.
    R = pl.cdiv(D, LANES)
    R_pad = _round_up(R, pack)
    D_pad = R_pad * LANES

    xf = x.reshape(B, D)
    if D_pad != D:  # slow path only for unaligned feature sizes
        xf = jnp.pad(xf, ((0, 0), (0, D_pad - D)))
    xf = xf.reshape(B, R_pad, LANES)

    # Block sizing: ~1 MiB of x per block. Big feature dims tile over rows
    # (TB=1, TR multiple of `pack`); small feature dims tile over batch.
    per_batch_bytes = R_pad * row_bytes
    if per_batch_bytes >= _TARGET_BLOCK_BYTES:
        TB = 1
        TR = max(pack, (_TARGET_BLOCK_BYTES // row_bytes) // pack * pack)
        TR = min(TR, R_pad)
    else:
        TR = R_pad
        TB = max(1, min(B, _TARGET_BLOCK_BYTES // per_batch_bytes))

    n_tiles = pl.cdiv(R_pad, TR)
    if n_tiles == 1 and B >= 2:
        # Ensure >= 2 grid steps so v7x's two TensorCores both get work.
        TB = min(TB, pl.cdiv(B, 2))
    grid = (pl.cdiv(B, TB), n_tiles)

    # One Bernoulli(keep_prob) draw per batch element; scale = keep / keep_prob.
    keep = jax.random.bernoulli(rng_key, p=float(keep_prob), shape=(B,))
    scale = (keep.astype(jnp.float32) / jnp.float32(keep_prob)).reshape(B, 1, 1)

    out = pl.pallas_call(
        _drop_path_kernel,
        out_shape=jax.ShapeDtypeStruct((B, R_pad, LANES), x.dtype),
        grid=grid,
        in_specs=[
            pl.BlockSpec((TB, TR, LANES), lambda b, t: (b, t, 0)),
            pl.BlockSpec((TB, 1, 1), lambda b, t: (b, 0, 0)),
        ],
        out_specs=pl.BlockSpec((TB, TR, LANES), lambda b, t: (b, t, 0)),
        compiler_params=pltpu.CompilerParams(
            # Pure elementwise scale: every grid axis is independent.
            dimension_semantics=("parallel", "parallel"),
        ),
    )(xf, scale)

    out = out.reshape(B, D_pad)
    if D_pad != D:
        out = out[:, :D]
    return out.reshape(orig_shape)


if __name__ == "__main__":
    key = jax.random.PRNGKey(0)
    k_data, k_mask, k_data2, k_mask2 = jax.random.split(key, 4)

    p = 0.5  # keep probability (DropPath(p=0.5) passes p straight as keep_prob)

    # Aligned shape (D = 4*16*16 = 1024): fast path, no pad / no slice.
    x = jax.random.normal(k_data, (2, 4, 16, 16), dtype=jnp.float32)
    y = drop_path_pallas(x, keep_prob=p, rng_key=k_mask, training=True)
    jax.block_until_ready(y)
    assert y.shape == x.shape and y.dtype == x.dtype
    for b in range(x.shape[0]):
        yb = y[b]
        dropped = bool(jnp.allclose(yb, 0.0))
        kept = bool(jnp.allclose(yb, x[b] / p, rtol=1e-5, atol=1e-5))
        assert dropped or kept, "per-batch mask must be a single scalar"

    # Unaligned shape (D = 5*7*9 = 315): exercises the padded / ragged path.
    x2 = jax.random.normal(k_data2, (3, 5, 7, 9), dtype=jnp.float32)
    y2 = drop_path_pallas(x2, keep_prob=p, rng_key=k_mask2, training=True)
    jax.block_until_ready(y2)
    assert y2.shape == x2.shape and y2.dtype == x2.dtype
    for b in range(x2.shape[0]):
        yb = y2[b]
        dropped = bool(jnp.allclose(yb, 0.0))
        kept = bool(jnp.allclose(yb, x2[b] / p, rtol=1e-5, atol=1e-5))
        assert dropped or kept, "per-batch mask must be a single scalar"

    # Eval mode (and p == 0) is identity, as in the module.
    y_eval = drop_path_pallas(x, keep_prob=p, rng_key=k_mask, training=False)
    assert bool(jnp.array_equal(y_eval, x))

    print("KERNEL_OK")
</pallas_src>

<mosaic_0001>
module attributes {stable_mosaic.version = 11 : i64} {
  func.func @_drop_path_kernel(%arg0: i32, %arg1: i32, %arg2: memref<1x8x128xf32, #tpu.memory_space<vmem>>, %arg3: memref<1x1x1xf32, #tpu.memory_space<vmem>>, %arg4: memref<1x8x128xf32, #tpu.memory_space<vmem>>) attributes {dimension_semantics = [#tpu.dimension_semantics<parallel>, #tpu.dimension_semantics<parallel>], iteration_bounds = array<i64: 2, 1>, scalar_prefetch = 0 : i64, scratch_operands = 0 : i64, tpu.core_type = #tpu.core_type<tc>, window_params = [{transform_indices = @transform_0, window_bounds = array<i64: 1, 8, 128>}, {transform_indices = @transform_1, window_bounds = array<i64: 1, 1, 1>}, {transform_indices = @transform_2, window_bounds = array<i64: 1, 8, 128>}]} {
    %c0 = arith.constant 0 : index
    %c0_0 = arith.constant 0 : index
    %c0_1 = arith.constant 0 : index
    %0 = vector.load %arg2[%c0, %c0_0, %c0_1] : memref<1x8x128xf32, #tpu.memory_space<vmem>>, vector<1x8x128xf32>
    %c0_2 = arith.constant 0 : index
    %c0_3 = arith.constant 0 : index
    %c0_4 = arith.constant 0 : index
    %1 = vector.load %arg3[%c0_2, %c0_3, %c0_4] : memref<1x1x1xf32, #tpu.memory_space<vmem>>, vector<1x1x1xf32>
    %2 = vector.broadcast %1 : vector<1x1x1xf32> to vector<1x8x128xf32>
    %3 = arith.mulf %0, %2 : vector<1x8x128xf32>
    %c0_5 = arith.constant 0 : index
    %c0_6 = arith.constant 0 : index
    %c0_7 = arith.constant 0 : index
    %4 = vector.load %arg4[%c0_5, %c0_6, %c0_7] : memref<1x8x128xf32, #tpu.memory_space<vmem>>, vector<1x8x128xf32>
    tpu.vector_store %arg4[%c0_5, %c0_6, %c0_7], %3 {strides = array<i32>} : memref<1x8x128xf32, #tpu.memory_space<vmem>>, vector<1x8x128xf32>,
    return
  }
  func.func @transform_0(%arg0: i32, %arg1: i32) -> (i32, i32, i32) {
    %c0_i32 = arith.constant 0 : i32
    %c0_i32_0 = arith.constant 0 : i32
    return %arg0, %arg1, %c0_i32 : i32, i32, i32
  }
  func.func @transform_1(%arg0: i32, %arg1: i32) -> (i32, i32, i32) {
    %c0_i32 = arith.constant 0 : i32
    %c0_i32_0 = arith.constant 0 : i32
    %c0_i32_1 = arith.constant 0 : i32
    return %arg0, %c0_i32, %c0_i32_0 : i32, i32, i32
  }
  func.func @transform_2(%arg0: i32, %arg1: i32) -> (i32, i32, i32) {
    %c0_i32 = arith.constant 0 : i32
    %c0_i32_0 = arith.constant 0 : i32
    return %arg0, %arg1, %c0_i32 : i32, i32, i32
  }
}

</mosaic_0001>

<bundles_post_ra>
// kernel: tpu_custom_call.1
= control target key start
LH: loop header
LB: loop body
LE: loop exit
PB: predicated region body
PF: predicated region fallthrough
CT: control target
= control target key end

     0   :  { %7 = vsyncpa [#allocation3], 0  ;;  %s641_s0 = inlined_call_operand.hbm [shape: f32[2,8,128], index: 0, kind: input, shape index: {}]   ;;  %s642_s1 = inlined_call_operand.vmem [shape: f32[2,1,1], index: 1, kind: input, shape index: {}]   ;;  %s643_s2 = inlined_call_operand.hbm [shape: f32[2,8,128], index: 2, kind: output, shape index: {}]  }
   0x1   :  { %9 = vsyncpa [#allocation3 + $0x1], 0 }
   0x2   :  { %10 = vsyncpa [#allocation4], 0 }
   0x3   :  { %12 = vsyncpa [#allocation4 + $0x1], 0  ;;  %s516_s9 = smov 0   ;;  %s518_s10 = smov 0  }
   0x4   :  { %s520_s11 = smov 0   ;;  %s522_s12 = smov 0  }
   0x5   :  { %s524_s13 = smov 0   ;;  %s526_s14 = smov 0  }
   0x6 LB: > { %s308_s15 = sadd.s32 4294967295, %s498_s14   ;;  %s309_s16 = sadd.s32 4294967294, %s498_s14   ;;  %s498_s14 = sphi %s526_s14, %s18_s14   ;;  %s494_s13 = sphi %s524_s13, %s652_s13   ;;  %s490_s12 = sphi %s522_s12, %s651_s12   ;;  %s486_s11 = sphi %s520_s11, %s650_s11   ;;  %s482_s10 = sphi %s518_s10, %s649_s10   ;;  %s478_s9 = sphi %s516_s9, %s648_s9  }
   0x7   : > { %s30_s17 = sadd.s32 1, %s494_s13  ;;  %s39_s18 = sadd.s32 1, %s486_s11 }
   0x8   : > { %p32_p0 = scmp.ge.s32.totalorder %s30_s17, 2  ;;  %p46_p1 = scmp.ne.s32.totalorder %s486_s11, %s482_s10 }
   0x9   : > { %p47_p2 = scmp.eq.s32.totalorder %s498_s14, 0  ;;  %p52_p3 = scmp.ne.s32.totalorder %s482_s10, %s478_s9 }
   0xa   : > { %s654_s17 = smov (%p32_p0, %s30_s17), 0  ;;  %p53_p5 = scmp.eq.s32.totalorder %s308_s15, 0 }
   0xb   : > { %p557_p4 = por %p47_p2, %p46_p1  ;;  %s34_s20 = ssub.s32 %s494_s13, %s654_s17 }
   0xc   : > { %p104_p6 = scmp.eq.s32.totalorder %s308_s15, 1  ;;  %p37_p7 = scmp.eq.s32.totalorder %s34_s20, 0 }
   0xd   : > { %p563_p8 = por %p53_p5, %p52_p3  ;;  %p110_p10 = scmp.eq.s32.totalorder %s309_s16, 1 }
   0xe   : > { %p567_p9 = por %p104_p6, %p46_p1  ;;  %p311_p12 = scmp.ge.s32.totalorder %s498_s14, 2 }
   0xf   : > { %s572_s23 = scalar_select %p37_p7, %s486_s11, %s39_s18  }
  0x10   : > { %p574_p11 = por %p110_p10, %p52_p3  ;;  %p333_p13 = scmp.lt.s32.totalorder %s498_s14, 2 }
  0x11   : > { %s130_s25 = sand.u32 1, %s486_s11   ;;  %s313_s27 = sshll.u32 %s494_s13, 3 }
  0x12   : > { %s312_s26 = sshll.u32 %s130_s25, 3  ;;  %s139_s30 = scalar_lea.hbm %s641_s0, %s313_s27 }
  0x13   : > { %s134_s3 = scalar_lea.vmem [#allocation2], %s312_s26  ;;  %s141_s5 = sshll.u32 %s139_s30, 4  ;;  %s142_s5 = int_to_ptr.hbm [resolvable:$true] %s141_s5 }
  0x14   : > { %s143_s4 = sshll.u32 %s134_s3, 4  ;;  %p326_p0 = pnand %p333_p13, %p557_p4  ;;  %s144_s4 = int_to_ptr.vmem [resolvable:$true] %s143_s4 }
  0x15   : > { %p314_p1 = scmp.ge.s32.totalorder %s498_s14, 1  ;;  %p154_p2 = scmp.lt.s32.totalorder %s498_s14, 3 }
  0x16   : > { %s131_s6 = scalar_lea.sflag [#allocation3], %s130_s25 }
  0x17   : > { %328 = dma.hbm_to_vmem [thread:$0]  (!%p326_p0), %s142_s5, 128, %s144_s4, %s131_s6  }
  0x18   : > { %p155_p3 = pnand %p314_p1, %p154_p2 }
  0x19   : > { %s590_s7 = sand.u32 (!%p155_p3), 1, %s482_s10  }
  0x1a   : > { %158 = sbr.rel (%p155_p3) target bundleno = 158 (0x9e), region = 28  ;;  %s315_s8 = sshll.u32 (!%p155_p3), %s590_s7, 3 }
  0x1b   : > { %s161_s15 = scalar_lea.sflag (!%p155_p3), [#allocation3], %s590_s7  ;;  %s164_s16 = scalar_lea.vmem (!%p155_p3), [#allocation2], %s315_s8 }
  0x1f   : > { %469 = dma.done.wait (%p563_p8), %s161_s15, 128  }
  0x20   : > { %471 = vsyncadd (%p563_p8), %s161_s15, 4294967168  ;;  %p189_p4 = scmp.lt.s32.totalorder %s490_s12, 1  ;;  %v500_v0 = vmov 0   ;;  %s318_s26 = sshll.u32 %s490_s12, 3  ;;  %v192_v2 = vld [vmem:[%s164_s16] sm:$0xff] }
  0x21   : > { %384 = vset.pattern.permute.xlu0 %v500_v0  ;;  %s214_s21 = scalar_lea.hbm %s643_s2, %s318_s26  ;;  %s188_s29 = scalar_lea.vmem [#allocation5], %s315_s8 }
  0x22   : > { %s190_s18 = scalar_select %p189_p4, %s490_s12, 1 }
  0x23   : > { %s216_s30 = sshll.u32 %s188_s29, 4  ;;  %s218_s3 = sshll.u32 %s214_s21, 4  ;;  %s217_s30 = int_to_ptr.vmem [resolvable:$true] %s216_s30  ;;  %s219_s3 = int_to_ptr.hbm [resolvable:$true] %s218_s3 }
  0x24   : > { %s191_s25 = scalar_lea.vmem %s642_s1, %s190_s18  ;;  %s203_s4 = scalar_lea.sflag [#allocation4], %s590_s7 }
  0x25   : > { %v385_v1 = vld [vmem:[%s191_s25] ss:$0 sm:$0xff]  ;;  %s430_s5 = sshra.s32 %s219_s3, 4  ;;  %s436_s16 = scalar_lea.hbm %s643_s2, 16  ;;  %s431_s5 = int_to_ptr.hbm [resolvable:$true] %s430_s5 }
  0x26   : > { %197 = vperm.xlu0 %384, %v385_v1   ;;  %s432_s6 = scalar_lea.hbm %s431_s5, 8  ;;  %p437_p8 = scmp.lt.s32.totalorder %s431_s5, %s643_s2 }
  0x27   : > { %p433_p5 = scmp.ne.s32.totalorder %s431_s5, %s432_s6  ;;  %p438_p10 = scmp.lt.s32.totalorder %s436_s16, %s432_s6 }
  0x29   : > { %p434_p6 = pnand %p433_p5, %p567_p9  ;;  %p439_p13 = por %p438_p10, %p437_p8 }
  0x2b   : > { %p435_p7 = pneg %p434_p6 }
  0x2d   : > { %p440_p0 = pnand %p439_p13, %p435_p7 }
  0x98   : > { %v198_v3 = vpop.permute.xlu0 %197 }
  0x99   : > { %v200_v4 = vmul.f32 %v198_v3, %v192_v2 }
  0x9b   : > { %201 = vst [vmem:[%s188_s29] sm:$0xff] %v200_v4 }
  0x9c   : > { %443 = shalt.err (!%p440_p0)
}
  0x9d   : > { %323 = dma.vmem_to_hbm [thread:$0]  (%p567_p9), %s217_s30, 128, %s219_s3, %s203_s4  }
  0x9e PF: > { %s230_s7 = sand.u32 1, %s478_s9   ;;  %p330_p1 = pnand %p311_p12, %p574_p11 }
  0x9f   : > { %s231_s19 = scalar_lea.sflag [#allocation4], %s230_s7 }
  0xa0   : > { %p331_p2 = pneg %p330_p1 }
  0xa2   : > { %473 = dma.done.wait (%p331_p2), %s231_s19, 128  }
  0xa3   : > { %475 = vsyncadd (%p331_p2), %s231_s19, 4294967168  ;;  %s18_s14 = sadd.s32 1, %s498_s14   ;;  %s648_s9 = smov %s482_s10 }
  0xa4   : > { %p15_p3 = scmp.ge.s32.totalorder %s18_s14, 4   ;;  %s649_s10 = smov %s486_s11 }
  0xa5   : > { %s650_s11 = smov %s572_s23  ;;  %s651_s12 = smov %s494_s13 }
  0xa6   : > { %s652_s13 = smov %s654_s17  ;;  %17 = sbr.rel (!%p15_p3) target bundleno = 6 (0x6), region = 76 }
  0xab   :  { %237 = vsyncpa [#allocation3], 1 }
  0xac   :  { %239 = vsyncpa [#allocation3 + $0x1], 1 }
  0xad   :  { %240 = vsyncpa [#allocation4], 1 }
  0xae   :  { %242 = vsyncpa [#allocation4 + $0x1], 1 }

</bundles_post_ra>
